<compile_context>
chip_gen: v7x
topology: tpu7x:2x2x1
jax: 0.10.0
libtpu: 0.0.40
codegen_flags: <defaults>
</compile_context>

<pallas_src>
import jax
import jax.numpy as jnp
from jax import lax
from jax.experimental import pallas as pl
from jax.experimental.pallas import tpu as pltpu

_LANES = 128
_TARGET_BLOCK_BYTES = 2 * 1024 * 1024   # ~2 MiB of native-dtype data per block
_MAX_BLOCK_ROWS = 8192                  # hard cap on rows per block


def _make_minmax_kernel(total_rows: int, block_rows: int):
    """Min/max reduction over a (total_rows, 128) array walked in
    (block_rows, 128) blocks along grid axis 0. `ragged` (static) enables
    masking of the short last block only."""
    ragged = (total_rows % block_rows) != 0
    groups = block_rows // 8

    def kernel(x_ref, min_ref, max_ref, acc_min, acc_max):
        i = pl.program_id(0)
        last = pl.num_programs(0) - 1

        @pl.when(i == 0)
        def _init():
            acc_min[...] = jnp.full_like(acc_min, jnp.inf)
            acc_max[...] = jnp.full_like(acc_max, -jnp.inf)

        # Native-dtype HBM->VMEM DMA; cast to f32 in-register on the VPU so the
        # downstream reshape/reduce always sees 32-bit (8,128)-tiled layout.
        tile = x_ref[...].astype(jnp.float32)

        def _fold(tmin, tmax):
            # (block_rows, 128) -> (groups, 8, 128) is vreg-tile aligned (free);
            # the axis-0 reduce is elementwise VPU work, hidden under the DMA.
            blk_min = jnp.min(tmin.reshape(groups, 8, _LANES), axis=0)
            blk_max = jnp.max(tmax.reshape(groups, 8, _LANES), axis=0)
            acc_min[...] = jnp.minimum(acc_min[...], blk_min)
            acc_max[...] = jnp.maximum(acc_max[...], blk_max)

        if ragged:
            # Only the last block can be short; keep masking off the hot path.
            @pl.when(i != last)
            def _full():
                _fold(tile, tile)

            @pl.when(i == last)
            def _masked():
                limit = total_rows - i * block_rows
                row_ids = lax.broadcasted_iota(jnp.int32, tile.shape, 0)
                valid = row_ids < limit
                _fold(jnp.where(valid, tile, jnp.inf),
                      jnp.where(valid, tile, -jnp.inf))
        else:
            _fold(tile, tile)

        # Single cross-lane/sublane reduction + SMEM scalar store, epilogue only.
        @pl.when(i == last)
        def _fin():
            min_ref[0] = jnp.min(acc_min[...])
            max_ref[0] = jnp.max(acc_max[...])

    return kernel


@jax.jit
def _pallas_minmax(x: jax.Array):
    """Returns (min, max) of x as float32 scalars via a Pallas reduction."""
    flat = x.reshape(-1)  # contiguous reshape: free
    n = flat.shape[0]
    if n == 0:
        raise ValueError("MinMaxObserver: cannot observe an empty tensor")

    if not jnp.issubdtype(flat.dtype, jnp.floating):
        # Integer observers are unusual; let XLA's fused reduction handle them.
        return (jnp.min(flat).astype(jnp.float32),
                jnp.max(flat).astype(jnp.float32))

    rows = n // _LANES
    rem = n - rows * _LANES

    if rows < 8:
        # Small-tensor fast path: launch + pipeline warmup would dominate.
        return (jnp.min(flat).astype(jnp.float32),
                jnp.max(flat).astype(jnp.float32))

    itemsize = jnp.dtype(flat.dtype).itemsize
    max_rows = min(_MAX_BLOCK_ROWS,
                   max(8, (_TARGET_BLOCK_BYTES // (_LANES * itemsize)) // 8 * 8))
    block_rows = max_rows if rows >= max_rows else (rows // 8) * 8
    num_blocks = (rows + block_rows - 1) // block_rows

    # For n % 128 == 0 this is a pure bitcast reshape (no HBM copy).  Only a
    # sub-128-element remainder (if any) is handled outside the kernel.
    body = flat if rem == 0 else flat[: rows * _LANES]
    x2d = body.reshape(rows, _LANES)

    kernel = _make_minmax_kernel(rows, block_rows)

    min_out, max_out = pl.pallas_call(
        kernel,
        out_shape=(
            jax.ShapeDtypeStruct((1,), jnp.float32),
            jax.ShapeDtypeStruct((1,), jnp.float32),
        ),
        grid_spec=pltpu.PrefetchScalarGridSpec(
            num_scalar_prefetch=0,
            grid=(num_blocks,),
            in_specs=[
                pl.BlockSpec((block_rows, _LANES), lambda i: (i, 0)),
            ],
            out_specs=[
                pl.BlockSpec(memory_space=pltpu.MemorySpace.SMEM),
                pl.BlockSpec(memory_space=pltpu.MemorySpace.SMEM),
            ],
            scratch_shapes=[
                pltpu.VMEM((8, _LANES), jnp.float32),
                pltpu.VMEM((8, _LANES), jnp.float32),
            ],
        ),
        compiler_params=pltpu.CompilerParams(
            dimension_semantics=("arbitrary",),  # running reduction over the grid
        ),
    )(x2d)

    cur_min = min_out[0]
    cur_max = max_out[0]

    if rem:
        tail = flat[rows * _LANES:]
        cur_min = jnp.minimum(cur_min, jnp.min(tail).astype(jnp.float32))
        cur_max = jnp.maximum(cur_max, jnp.max(tail).astype(jnp.float32))
    return cur_min, cur_max


class MinMaxObserver:
    """JAX/Pallas port of torch.quantization.observer.MinMaxObserver.

    dtype: 'quint8' or 'qint8'; qscheme: 'per_tensor_affine' or
    'per_tensor_symmetric' (matching the PyTorch module's options).

    Note: like the PyTorch module, running min/max are stored as attributes
    (Python side-effect); wrap state functionally if you need to jit forward().
    """

    def __init__(self, dtype="quint8", qscheme="per_tensor_affine"):
        assert dtype in ("quint8", "qint8")
        assert qscheme in ("per_tensor_affine", "per_tensor_symmetric")
        self.dtype = dtype
        self.qscheme = qscheme
        self.eps = float(jnp.finfo(jnp.float32).eps)
        self.min_val = None
        self.max_val = None

    def __call__(self, x):
        return self.forward(x)

    def forward(self, x):
        cur_min, cur_max = _pallas_minmax(x)
        if self.min_val is None or self.max_val is None:
            min_val, max_val = cur_min, cur_max
        else:
            min_val = jnp.minimum(cur_min, self.min_val)
            max_val = jnp.maximum(cur_max, self.max_val)
        self.min_val = min_val
        self.max_val = max_val
        return x  # observer is identity on the data path

    def calculate_qparams(self):
        # Note: float(...) forces a host sync (same semantics as the PyTorch module).
        if self.min_val is None or self.max_val is None:
            raise Exception("must run observer before calling calculate_qparams!")
        if self.dtype == "qint8":
            qmin, qmax = -128, 127
        else:
            qmin, qmax = 0, 255
        min_val = min(0.0, float(self.min_val))
        max_val = max(0.0, float(self.max_val))
        if max_val == min_val:
            scale, zero_point = 1.0, 0
        elif self.qscheme == "per_tensor_symmetric":
            max_val = max(-min_val, max_val)
            scale = max(max_val / ((qmax - qmin) / 2), self.eps)
            zero_point = 0 if self.dtype == "qint8" else 128
        else:
            scale = max((max_val - min_val) / float(qmax - qmin), self.eps)
            zero_point = qmin - round(min_val / scale)
            zero_point = int(min(qmax, max(qmin, zero_point)))
        return jnp.array([scale], jnp.float32), jnp.array([zero_point], jnp.int32)


if __name__ == "__main__":
    key = jax.random.PRNGKey(0)
    k1, k2, k3 = jax.random.split(key, 3)

    # NCHW input, small shapes (2048 elements -> exercises the Pallas kernel path).
    x = jax.random.normal(k1, (2, 4, 16, 16), dtype=jnp.float32) * 3.0 + 0.5

    obs = MinMaxObserver(dtype="quint8", qscheme="per_tensor_affine")

    # First observation.
    y = obs(x)
    jax.block_until_ready(y)

    # Second observation (exercises the running min/max update path).
    x2 = jax.random.normal(k2, (2, 4, 16, 16), dtype=jnp.float32) * 5.0 - 1.0
    y2 = obs(x2)
    jax.block_until_ready(y2)

    # Correctness checks vs. plain jnp reference.
    ref_min = jnp.minimum(jnp.min(x), jnp.min(x2))
    ref_max = jnp.maximum(jnp.max(x), jnp.max(x2))
    assert jnp.allclose(obs.min_val, ref_min), (obs.min_val, ref_min)
    assert jnp.allclose(obs.max_val, ref_max), (obs.max_val, ref_max)
    assert jnp.array_equal(y2, x2)  # forward returns x unchanged

    scale, zp = obs.calculate_qparams()
    jax.block_until_ready((scale, zp))

    # Extra check: awkward (non-128-divisible) size exercises the in-kernel
    # masked last block and the wrapper tail fold.
    z = jax.random.normal(k3, (3, 5, 17, 19), dtype=jnp.float32) * 2.0  # 4845 elems
    obs2 = MinMaxObserver(dtype="qint8", qscheme="per_tensor_symmetric")
    obs2(z)
    assert jnp.allclose(obs2.min_val, jnp.min(z)), (obs2.min_val, jnp.min(z))
    assert jnp.allclose(obs2.max_val, jnp.max(z)), (obs2.max_val, jnp.max(z))

    # Extra check: native-dtype (bf16) path — no wrapper-side f32 upcast copy.
    zb = z.astype(jnp.bfloat16)
    obs3 = MinMaxObserver()
    obs3(zb)
    assert jnp.allclose(obs3.min_val, jnp.min(zb).astype(jnp.float32))
    assert jnp.allclose(obs3.max_val, jnp.max(zb).astype(jnp.float32))

    print("KERNEL_OK")
</pallas_src>

<mosaic_0001>
module attributes {stable_mosaic.version = 11 : i64} {
  func.func @kernel(%arg0: i32, %arg1: memref<16x128xf32, #tpu.memory_space<vmem>>, %arg2: memref<1xf32, #tpu.memory_space<smem>>, %arg3: memref<1xf32, #tpu.memory_space<smem>>, %arg4: memref<8x128xf32, #tpu.memory_space<vmem>>, %arg5: memref<8x128xf32, #tpu.memory_space<vmem>>) attributes {dimension_semantics = [#tpu.dimension_semantics<arbitrary>], iteration_bounds = array<i64: 1>, scalar_prefetch = 0 : i64, scratch_operands = 2 : i64, tpu.core_type = #tpu.core_type<tc>, window_params = [{transform_indices = @transform_0, window_bounds = array<i64: 16, 128>}, {transform_indices = @transform_1, window_bounds = array<i64: 1>}, {transform_indices = @transform_2, window_bounds = array<i64: 1>}]} {
    %c0_i32 = arith.constant 0 : i32
    %0 = arith.cmpi eq, %arg0, %c0_i32 : i32
    %1 = arith.extui %0 : i1 to i32
    %c0_i32_0 = arith.constant 0 : i32
    %2 = arith.cmpi ne, %1, %c0_i32_0 : i32
    scf.if %2 {
      %cst_13 = arith.constant 0x7F800000 : f32
      %17 = vector.broadcast %cst_13 : f32 to vector<8x128xf32>
      %c0_14 = arith.constant 0 : index
      %c0_15 = arith.constant 0 : index
      %18 = vector.load %arg4[%c0_14, %c0_15] : memref<8x128xf32, #tpu.memory_space<vmem>>, vector<8x128xf32>
      tpu.vector_store %arg4[%c0_14, %c0_15], %17 {strides = array<i32>} : memref<8x128xf32, #tpu.memory_space<vmem>>, vector<8x128xf32>,
      %cst_16 = arith.constant 0xFF800000 : f32
      %19 = vector.broadcast %cst_16 : f32 to vector<8x128xf32>
      %c0_17 = arith.constant 0 : index
      %c0_18 = arith.constant 0 : index
      %20 = vector.load %arg5[%c0_17, %c0_18] : memref<8x128xf32, #tpu.memory_space<vmem>>, vector<8x128xf32>
      tpu.vector_store %arg5[%c0_17, %c0_18], %19 {strides = array<i32>} : memref<8x128xf32, #tpu.memory_space<vmem>>, vector<8x128xf32>,
    } else {
    }
    %c0 = arith.constant 0 : index
    %c0_1 = arith.constant 0 : index
    %3 = vector.load %arg1[%c0, %c0_1] : memref<16x128xf32, #tpu.memory_space<vmem>>, vector<16x128xf32>
    %4 = vector.shape_cast %3 : vector<16x128xf32> to vector<2x8x128xf32>
    %cst = arith.constant dense<0x7F800000> : vector<8x128xf32>
    %5 = vector.multi_reduction <minimumf>, %4, %cst [0] : vector<2x8x128xf32> to vector<8x128xf32>
    %6 = vector.shape_cast %3 : vector<16x128xf32> to vector<2x8x128xf32>
    %cst_2 = arith.constant dense<0xFF800000> : vector<8x128xf32>
    %7 = vector.multi_reduction <maximumf>, %6, %cst_2 [0] : vector<2x8x128xf32> to vector<8x128xf32>
    %c0_3 = arith.constant 0 : index
    %c0_4 = arith.constant 0 : index
    %8 = vector.load %arg4[%c0_3, %c0_4] : memref<8x128xf32, #tpu.memory_space<vmem>>, vector<8x128xf32>
    %9 = arith.minimumf %8, %5 : vector<8x128xf32>
    %c0_5 = arith.constant 0 : index
    %c0_6 = arith.constant 0 : index
    %10 = vector.load %arg4[%c0_5, %c0_6] : memref<8x128xf32, #tpu.memory_space<vmem>>, vector<8x128xf32>
    tpu.vector_store %arg4[%c0_5, %c0_6], %9 {strides = array<i32>} : memref<8x128xf32, #tpu.memory_space<vmem>>, vector<8x128xf32>,
    %c0_7 = arith.constant 0 : index
    %c0_8 = arith.constant 0 : index
    %11 = vector.load %arg5[%c0_7, %c0_8] : memref<8x128xf32, #tpu.memory_space<vmem>>, vector<8x128xf32>
    %12 = arith.maximumf %11, %7 : vector<8x128xf32>
    %c0_9 = arith.constant 0 : index
    %c0_10 = arith.constant 0 : index
    %13 = vector.load %arg5[%c0_9, %c0_10] : memref<8x128xf32, #tpu.memory_space<vmem>>, vector<8x128xf32>
    tpu.vector_store %arg5[%c0_9, %c0_10], %12 {strides = array<i32>} : memref<8x128xf32, #tpu.memory_space<vmem>>, vector<8x128xf32>,
    %c0_i32_11 = arith.constant 0 : i32
    %14 = arith.cmpi eq, %arg0, %c0_i32_11 : i32
    %15 = arith.extui %14 : i1 to i32
    %c0_i32_12 = arith.constant 0 : i32
    %16 = arith.cmpi ne, %15, %c0_i32_12 : i32
    scf.if %16 {
      %c0_13 = arith.constant 0 : index
      %c0_14 = arith.constant 0 : index
      %17 = vector.load %arg4[%c0_13, %c0_14] : memref<8x128xf32, #tpu.memory_space<vmem>>, vector<8x128xf32>
      %18 = vector.shape_cast %17 : vector<8x128xf32> to vector<1x8x128xf32>
      %cst_15 = arith.constant dense<0x7F800000> : vector<1xf32>
      %19 = vector.multi_reduction <minimumf>, %18, %cst_15 [1, 2] : vector<1x8x128xf32> to vector<1xf32>
      %20 = vector.shape_cast %19 : vector<1xf32> to vector<1x1x1xf32>
      %21 = vector.extract %20[0, 0, 0] : f32 from vector<1x1x1xf32>
      %c0_16 = arith.constant 0 : index
      %22 = memref.load %arg2[%c0_16] : memref<1xf32, #tpu.memory_space<smem>>
      memref.store %21, %arg2[%c0_16] : memref<1xf32, #tpu.memory_space<smem>>
      %c0_17 = arith.constant 0 : index
      %c0_18 = arith.constant 0 : index
      %23 = vector.load %arg5[%c0_17, %c0_18] : memref<8x128xf32, #tpu.memory_space<vmem>>, vector<8x128xf32>
      %24 = vector.shape_cast %23 : vector<8x128xf32> to vector<1x8x128xf32>
      %cst_19 = arith.constant dense<0xFF800000> : vector<1xf32>
      %25 = vector.multi_reduction <maximumf>, %24, %cst_19 [1, 2] : vector<1x8x128xf32> to vector<1xf32>
      %26 = vector.shape_cast %25 : vector<1xf32> to vector<1x1x1xf32>
      %27 = vector.extract %26[0, 0, 0] : f32 from vector<1x1x1xf32>
      %c0_20 = arith.constant 0 : index
      %28 = memref.load %arg3[%c0_20] : memref<1xf32, #tpu.memory_space<smem>>
      memref.store %27, %arg3[%c0_20] : memref<1xf32, #tpu.memory_space<smem>>
    } else {
    }
    return
  }
  func.func @transform_0(%arg0: i32) -> (i32, i32) {
    %c0_i32 = arith.constant 0 : i32
    %c0_i32_0 = arith.constant 0 : i32
    return %arg0, %c0_i32 : i32, i32
  }
  func.func @transform_1(%arg0: i32) -> i32 {
    %c0_i32 = arith.constant 0 : i32
    %c0_i32_0 = arith.constant 0 : i32
    return %c0_i32 : i32
  }
  func.func @transform_2(%arg0: i32) -> i32 {
    %c0_i32 = arith.constant 0 : i32
    %c0_i32_0 = arith.constant 0 : i32
    return %c0_i32 : i32
  }
}

</mosaic_0001>

<bundles_post_ra>
// kernel: _pallas_minmax.1
= control target key start
LH: loop header
LB: loop body
LE: loop exit
PB: predicated region body
PF: predicated region fallthrough
CT: control target
= control target key end

     0   :  { %8 = vsyncpa [#allocation5], 0  ;;  %s157_s0 = inlined_call_operand.vmem [shape: f32[16,128], index: 0, kind: input, shape index: {}]   ;;  %s158_s1 = inlined_call_operand.hbm [shape: f32[1], index: 1, kind: output, shape index: {0}]   ;;  %s159_s2 = inlined_call_operand.hbm [shape: f32[1], index: 2, kind: output, shape index: {1}]  }
   0x1   :  { %v18_v0 = vld [vmem:[%s157_s0] sm:$0xff]  ;;  %v19_v1 = vld [vmem:[%s157_s0 + $0x8] sm:$0xff] }
   0x2   :  { %9 = vsyncpa [#allocation7], 0  ;;  %v20_v2 = vmin.f32 %v18_v0, %v19_v1  ;;  %v21_v3 = vmax.f32 %v18_v0, %v19_v1  ;;  %s86_s15 = scalar_lea.hbm %s158_s1, 16 }
   0x3   :  { %p87_p0 = scmp.ne.s32.totalorder %s158_s1, %s86_s15  ;;  %p90_p1 = scmp.lt.u32.totalorder %s86_s15, %s158_s1 }
   0x4   :  { %32 = vmin.xlane.f32.xlu0 %v20_v2 }
   0x5   :  { %p92_p2 = pnand %p90_p1, %p87_p0 }
   0x8   :  { %44 = vmax.xlane.f32.xlu0 %v21_v3 }
  0x91   :  { %v33_v4 = vpop.xlane.xlu0 %32 }
  0x92   :  { %v34_v5 = vrot.slane %v33_v4, 4 }
  0x94   :  { %v35_v6 = vmin.f32 %v33_v4, %v34_v5 }
  0x95   :  { %v45_v7 = vpop.xlane.xlu0 %44 }
  0x96   :  { %v36_v8 = vrot.slane %v35_v6, 2  ;;  %v46_v9 = vrot.slane %v45_v7, 4 }
  0x98   :  { %v47_v10 = vmax.f32 %v45_v7, %v46_v9  ;;  %v37_v11 = vmin.f32 %v35_v6, %v36_v8 }
  0x9a   :  { %v48_v12 = vrot.slane %v47_v10, 2  ;;  %v38_v13 = vrot.slane %v37_v11, 1 }
  0x9c   :  { %v49_v14 = vmax.f32 %v47_v10, %v48_v12  ;;  %v39_v15 = vmin.f32 %v37_v11, %v38_v13 }
  0x9e   :  { %80 = vpush %v39_v15  ;;  %v50_v16 = vrot.slane %v49_v14, 1 }
  0xa0   :  { %v51_v17 = vmax.f32 %v49_v14, %v50_v16 }
  0xa2   :  { %82 = vpush %v51_v17 }
  0xcf   :  { %s81_s0 = spop %80 }
  0xd0   :  { %42 = sst [smem:[#allocation4]] %s81_s0 }
  0xd1   :  { %95 = shalt.err (!%p92_p2)
}
  0xd2   :  { %s110_s20 = smov [#allocation4]   ;;  %s96_s26 = scalar_lea.hbm %s159_s2, 16 }
  0xd3   :  { %62 = dma.smem_to_hbm %s110_s20, 16, %s158_s1, [#allocation5]  }
  0xd4   :  { %s83_s23 = spop %82  ;;  %p97_p3 = scmp.ne.s32.totalorder %s159_s2, %s96_s26 }
  0xd5   :  { %54 = sst [smem:[#allocation6]] %s83_s23  ;;  %p100_p4 = scmp.lt.u32.totalorder %s96_s26, %s159_s2 }
  0xd7   :  { %p102_p5 = pnand %p100_p4, %p97_p3 }
  0xd9   :  { %105 = shalt.err (!%p102_p5)
}
  0xda   :  { %s111_s3 = smov [#allocation6]  }
  0xdb   :  { %70 = dma.smem_to_hbm %s111_s3, 16, %s159_s2, [#allocation7]  }
  0xdc   :  { %106 = dma.done.wait [#allocation5], 16  }
  0xdd   :  { %107 = vsyncadd [#allocation5], 4294967280 }
  0xde   :  { %108 = dma.done.wait [#allocation7], 16  }
  0xdf   :  { %109 = vsyncadd [#allocation7], 4294967280 }
  0xe0   :  { %77 = sfence }
  0xe1   :  { %78 = vsyncpa [#allocation5], 1 }
  0xe2   :  { %79 = vsyncpa [#allocation7], 1 }

</bundles_post_ra>
